<compile_context>
chip_gen: v5e
topology: v5e:2x2
jax: 0.10.0
libtpu: 0.0.40
codegen_flags: <defaults>
</compile_context>

<pallas_src>
import functools

import numpy as np

import jax
import jax.numpy as jnp
from jax.experimental import pallas as pl
from jax.experimental.pallas import tpu as pltpu


# ----------------------------------------------------------------------------
# Kernel.  Grid = (B, H // TH).  Args (in order):
#   t_ref     : (1, C, TH, W)  target row tile (native dtype, cast in-kernel)
#   per stage s: x_ref (1,C,Hin,Win), ah_ref (TH,Hin) bf16, awt_ref (Win,W) bf16
#   out_ref   : (1, 8, 128)    per-batch result block (written once at last tile)
#   acc_ref   : (8, 128) f32   VMEM scratch, partial sums live in distinct lanes:
#                              lane 0 = npos, lane 1+2s = pos_sum_s, lane 2+2s = tot_sum_s
#   per stage s: tmp_ref (C, Hin, W) bf16 scratch (W-upsampled logits, per batch)
# ----------------------------------------------------------------------------
def _scaled_cbce_kernel(*args, n_stages, C):
    t_ref = args[0]
    stage_refs = args[1:1 + 3 * n_stages]
    out_ref = args[1 + 3 * n_stages]
    acc_ref = args[2 + 3 * n_stages]
    tmp_refs = args[3 + 3 * n_stages:]

    h = pl.program_id(1)
    n_h = pl.num_programs(1)

    # -------- prologue: once per batch element (h == 0) --------
    @pl.when(h == 0)
    def _():
        acc_ref[...] = jnp.zeros_like(acc_ref)
        for s in range(n_stages):
            x_ref = stage_refs[3 * s]
            awt = stage_refs[3 * s + 2][...]                    # (Win, W) bf16
            for c in range(C):
                xc = x_ref[0, c].astype(jnp.bfloat16)           # (Hin, Win)
                # W-direction upsample on the MXU, cached in bf16 scratch
                tmp_refs[s][c] = jnp.dot(
                    xc, awt, preferred_element_type=jnp.float32
                ).astype(jnp.bfloat16)                          # (Hin, W)

    # -------- per H row-tile body: channel-outer loop (no transposes) --------
    npos = jnp.float32(0.0)
    pos_sums = [jnp.float32(0.0)] * n_stages
    tot_sums = [jnp.float32(0.0)] * n_stages
    for c in range(C):
        t_c = t_ref[0, c].astype(jnp.float32)                   # (TH, W) lane-dense
        mask = t_c > 0.5
        npos = npos + jnp.sum(mask.astype(jnp.float32))
        for s in range(n_stages):
            ah = stage_refs[3 * s + 1][...]                      # (TH, Hin) bf16
            # H-direction upsample of this row tile on the MXU (bf16 in, f32 acc)
            z = jnp.dot(ah, tmp_refs[s][c],
                        preferred_element_type=jnp.float32)      # (TH, W) logits
            # class-balanced BCE in the logits domain: softplus(z) - t*z
            elem = (jnp.maximum(z, 0.0)
                    + jnp.log(1.0 + jnp.exp(-jnp.abs(z)))
                    - t_c * z)
            pos_sums[s] = pos_sums[s] + jnp.sum(jnp.where(mask, elem, 0.0))
            tot_sums[s] = tot_sums[s] + jnp.sum(elem)

    # one small vreg RMW per step carries ALL partial sums (distinct lanes)
    lane = jax.lax.broadcasted_iota(jnp.int32, acc_ref.shape, 1)
    upd = jnp.zeros(acc_ref.shape, jnp.float32)
    upd = jnp.where(lane == 0, npos, upd)
    for s in range(n_stages):
        upd = jnp.where(lane == 1 + 2 * s, pos_sums[s], upd)
        upd = jnp.where(lane == 2 + 2 * s, tot_sums[s], upd)
    acc_ref[...] += upd

    # -------- epilogue: single output write per batch element --------
    @pl.when(h == n_h - 1)
    def _():
        out_ref[0] = acc_ref[...]


# ----------------------------------------------------------------------------
# Glue
# ----------------------------------------------------------------------------
def _interp_matrix(out_size, in_size):
    """Row-interpolation matrix for bilinear, align_corners=True (static numpy)."""
    scale = (in_size - 1) / (out_size - 1) if out_size > 1 else 0.0
    src = np.arange(out_size, dtype=np.float64) * scale
    i0 = np.clip(np.floor(src).astype(np.int64), 0, in_size - 1)
    i1 = np.clip(i0 + 1, 0, in_size - 1)
    frac = (src - i0).astype(np.float32)
    m = np.zeros((out_size, in_size), np.float32)
    rows = np.arange(out_size)
    m[rows, i0] += (1.0 - frac)
    m[rows, i1] += frac
    return m


def _vmem_capacity_bytes():
    """Physical VMEM per core (64 MiB on v7x, 128 MiB on v5e/v6e); safe fallback."""
    try:
        cap = int(getattr(pltpu.get_tpu_info(), "vmem_capacity_bytes"))
        if cap > 0:
            return cap
    except Exception:
        pass
    return 64 * 1024 * 1024


def _pick_h_tile(H, W, C, stage_dims, tgt_itemsize, vmem_budget):
    """Largest multiple-of-8 divisor of H such that ALL VMEM residents fit:
    bf16 per-stage scratch, double-buffered input blocks (native dtypes),
    double-buffered output block, and ~6 live f32 (TH, W) temporaries."""
    fixed = 2 * 8 * 128 * 4 + 8 * 128 * 4               # out block (x2) + acc scratch
    for (Hin, Win, p_itemsize) in stage_dims:
        fixed += C * Hin * W * 2                         # bf16 W-upsampled scratch
        fixed += 2 * C * Hin * Win * p_itemsize          # pred block, double buffered
        fixed += 2 * Win * W * 2                         # awt block (bf16), dbl buffered

    def tile_bytes(th):
        b = 2 * C * th * W * tgt_itemsize                # target block, double buffered
        b += 6 * th * W * 4                              # live f32 temporaries (1 channel)
        for (Hin, _, _) in stage_dims:
            b += 2 * th * Hin * 2                        # ah block (bf16), dbl buffered
        return b

    cands = [th for th in range(8, H + 1, 8) if H % th == 0]
    if not cands:
        return H                                         # block == full dim is always legal
    fitting = [th for th in cands if fixed + tile_bytes(th) <= vmem_budget]
    return max(fitting) if fitting else min(cands)


def scaled_cbce_loss(preds, target, stage_weights):
    """sum_s stage_weights[s] * CriterionCBCE(sigmoid(interp(preds[s])), target)."""
    B, C, H, W = target.shape
    n_stages = len(preds)
    stage_dims = [(int(p.shape[2]), int(p.shape[3]), p.dtype.itemsize) for p in preds]

    vmem_cap = _vmem_capacity_bytes()
    vmem_limit = min(int(vmem_cap * 3 // 4), 96 * 1024 * 1024)   # 48 MiB v7x, 96 MiB v5e/v6e
    TH = _pick_h_tile(H, W, C, stage_dims, target.dtype.itemsize,
                      int(vmem_limit * 0.8))
    nH = H // TH

    in_specs = [pl.BlockSpec((1, C, TH, W), lambda bb, hh: (bb, 0, hh, 0))]
    operands = [target]                                   # native dtype; cast per tile in-kernel
    scratch_shapes = [pltpu.VMEM((8, 128), jnp.float32)]  # partial-sum accumulator
    for p in preds:
        Bp, Cp, Hin, Win = p.shape
        assert Bp == B and Cp == C
        ah = jnp.asarray(_interp_matrix(H, Hin), dtype=jnp.bfloat16)      # (H, Hin)
        awt = jnp.asarray(_interp_matrix(W, Win).T, dtype=jnp.bfloat16)   # (Win, W)
        in_specs += [
            pl.BlockSpec((1, C, Hin, Win), lambda bb, hh: (bb, 0, 0, 0)),
            pl.BlockSpec((TH, Hin), lambda bb, hh: (hh, 0)),
            pl.BlockSpec((Win, W), lambda bb, hh: (0, 0)),
        ]
        operands += [p, ah, awt]
        scratch_shapes.append(pltpu.VMEM((C, Hin, W), jnp.bfloat16))

    kernel = functools.partial(_scaled_cbce_kernel, n_stages=n_stages, C=C)

    # TODO(synk): for B=1 on v7x the second TensorCore is idle; splitting the H
    # range across a leading core axis (with per-core partial sums reduced in
    # JAX) would recover ~2x there, but requires moving the W-upsample prologue
    # out of the h==0 phase.
    out = pl.pallas_call(
        kernel,
        out_shape=jax.ShapeDtypeStruct((B, 8, 128), jnp.float32),
        grid_spec=pltpu.PrefetchScalarGridSpec(
            num_scalar_prefetch=0,
            grid=(B, nH),
            in_specs=in_specs,
            out_specs=pl.BlockSpec((1, 8, 128), lambda bb, hh: (bb, 0, 0)),
            scratch_shapes=scratch_shapes,
        ),
        compiler_params=pltpu.CompilerParams(
            dimension_semantics=("parallel", "arbitrary"),
            vmem_limit_bytes=vmem_limit),
    )(*operands)

    # Tiny epilogue: apply the per-batch class-balance scalars to the partial sums.
    vals = out[:, 0, :]                                   # (B, 128)
    npos = vals[:, 0]
    total = jnp.float32(C * H * W)
    w_pos = (total - npos) / total                        # weight where edges >  0.5
    w_neg = npos / total                                  # weight where edges <= 0.5
    loss_b = jnp.zeros((B,), jnp.float32)
    for s, sw in enumerate(stage_weights):
        pos_s = vals[:, 1 + 2 * s]
        neg_s = vals[:, 2 + 2 * s] - pos_s                # tot - pos
        loss_b = loss_b + jnp.float32(sw) * (w_pos * pos_s + w_neg * neg_s)
    return jnp.sum(loss_b) / jnp.float32(B)


def criterion_scaled_cbce(preds, target, stages=2):
    """Forward of CriterionScaledCBCE: preds is a list of NCHW logit maps."""
    if len(preds) >= 2 and stages == 2:
        return scaled_cbce_loss(preds[:2], target, (1.0, 0.4))
    elif len(preds) == 1 or stages == 1:
        return scaled_cbce_loss(preds[:1], target, (1.0,))
    raise ValueError("unsupported (len(preds), stages) combination")


# ---------------------------- pure-JAX reference ----------------------------
# Follows torch exactly: bilinear(align_corners=True) -> sigmoid -> BCE with the
# -100 log clamp, class-balanced per batch element (full f32).
def _ref_cbce(pred_logits, target):
    B, C, Hin, Win = pred_logits.shape
    _, _, H, W = target.shape
    ah = jnp.asarray(_interp_matrix(H, Hin))
    aw = jnp.asarray(_interp_matrix(W, Win))
    up = jnp.einsum('Hh,bchw,Ww->bcHW', ah, pred_logits.astype(jnp.float32), aw)
    p = 1.0 / (1.0 + jnp.exp(-up))
    t = target.astype(jnp.float32)
    total = jnp.float32(C * H * W)
    num_pos = jnp.sum((t > 0.5).astype(jnp.float32), axis=(1, 2, 3), keepdims=True)
    num_neg = total - num_pos
    w = jnp.where(t > 0.5, num_neg / total, num_pos / total)
    log_p = jnp.maximum(jnp.log(p), -100.0)
    log_1mp = jnp.maximum(jnp.log(1.0 - p), -100.0)
    loss = -w * (t * log_p + (1.0 - t) * log_1mp)
    return jnp.sum(loss) / B


if __name__ == "__main__":
    key = jax.random.PRNGKey(0)
    k0, k1, k2 = jax.random.split(key, 3)

    B, C, H, W = 2, 1, 16, 16
    # two prediction stages at coarser resolutions (raw logits, pre-sigmoid)
    pred0 = jax.random.normal(k0, (B, C, 8, 8), jnp.float32)
    pred1 = jax.random.normal(k1, (B, C, 4, 4), jnp.float32)
    # binary edge target
    target = (jax.random.uniform(k2, (B, C, H, W)) > 0.7).astype(jnp.float32)

    # two-stage path (the default forward); tolerance covers bf16 MXU inputs
    loss2 = jax.block_until_ready(criterion_scaled_cbce([pred0, pred1], target, stages=2))
    ref2 = _ref_cbce(pred0, target) + 0.4 * _ref_cbce(pred1, target)
    assert jnp.allclose(loss2, ref2, rtol=3e-2, atol=5e-2), (loss2, ref2)

    # single-stage path
    loss1 = jax.block_until_ready(criterion_scaled_cbce([pred0], target, stages=1))
    ref1 = _ref_cbce(pred0, target)
    assert jnp.allclose(loss1, ref1, rtol=3e-2, atol=5e-2), (loss1, ref1)

    # target may be supplied at a narrower dtype (binary edges): cast happens
    # per-tile inside the kernel, halving HBM traffic on the dominant stream.
    loss2_bf16t = jax.block_until_ready(
        criterion_scaled_cbce([pred0, pred1], target.astype(jnp.bfloat16), stages=2))
    assert jnp.allclose(loss2_bf16t, loss2, rtol=1e-5, atol=1e-5), (loss2_bf16t, loss2)

    print("KERNEL_OK")
</pallas_src>

<mosaic_0001>
module attributes {stable_mosaic.version = 11 : i64} {
  func.func @_scaled_cbce_kernel(%arg0: i32, %arg1: i32, %arg2: memref<1x1x16x16xf32, #tpu.memory_space<vmem>>, %arg3: memref<1x1x8x8xf32, #tpu.memory_space<vmem>>, %arg4: memref<16x8xbf16, #tpu.memory_space<vmem>>, %arg5: memref<8x16xbf16, #tpu.memory_space<vmem>>, %arg6: memref<1x1x4x4xf32, #tpu.memory_space<vmem>>, %arg7: memref<16x4xbf16, #tpu.memory_space<vmem>>, %arg8: memref<4x16xbf16, #tpu.memory_space<vmem>>, %arg9: memref<1x8x128xf32, #tpu.memory_space<vmem>>, %arg10: memref<8x128xf32, #tpu.memory_space<vmem>>, %arg11: memref<1x8x16xbf16, #tpu.memory_space<vmem>>, %arg12: memref<1x4x16xbf16, #tpu.memory_space<vmem>>) attributes {dimension_semantics = [#tpu.dimension_semantics<parallel>, #tpu.dimension_semantics<arbitrary>], iteration_bounds = array<i64: 2, 1>, scalar_prefetch = 0 : i64, scratch_operands = 3 : i64, tpu.core_type = #tpu.core_type<tc>, window_params = [{transform_indices = @transform_0, window_bounds = array<i64: 1, 1, 16, 16>}, {transform_indices = @transform_1, window_bounds = array<i64: 1, 1, 8, 8>}, {transform_indices = @transform_2, window_bounds = array<i64: 16, 8>}, {pipeline_mode = #tpu.pipeline_mode<synchronous>, transform_indices = @transform_3, window_bounds = array<i64: 8, 16>}, {transform_indices = @transform_4, window_bounds = array<i64: 1, 1, 4, 4>}, {transform_indices = @transform_5, window_bounds = array<i64: 16, 4>}, {pipeline_mode = #tpu.pipeline_mode<synchronous>, transform_indices = @transform_6, window_bounds = array<i64: 4, 16>}, {transform_indices = @transform_7, window_bounds = array<i64: 1, 8, 128>}]} {
    %c0_i32 = arith.constant 0 : i32
    %0 = arith.cmpi eq, %arg1, %c0_i32 : i32
    %1 = arith.extui %0 : i1 to i32
    %c0_i32_0 = arith.constant 0 : i32
    %2 = arith.cmpi ne, %1, %c0_i32_0 : i32
    scf.if %2 {
      %cst_42 = arith.constant 0.000000e+00 : f32
      %98 = vector.broadcast %cst_42 : f32 to vector<8x128xf32>
      %c0_43 = arith.constant 0 : index
      %c0_44 = arith.constant 0 : index
      %99 = vector.load %arg10[%c0_43, %c0_44] : memref<8x128xf32, #tpu.memory_space<vmem>>, vector<8x128xf32>
      tpu.vector_store %arg10[%c0_43, %c0_44], %98 {strides = array<i32>} : memref<8x128xf32, #tpu.memory_space<vmem>>, vector<8x128xf32>,
      %c0_45 = arith.constant 0 : index
      %c0_46 = arith.constant 0 : index
      %100 = vector.load %arg5[%c0_45, %c0_46] : memref<8x16xbf16, #tpu.memory_space<vmem>>, vector<8x16xbf16>
      %c0_47 = arith.constant 0 : index
      %c0_48 = arith.constant 0 : index
      %c0_49 = arith.constant 0 : index
      %c0_50 = arith.constant 0 : index
      %101 = vector.load %arg3[%c0_47, %c0_48, %c0_49, %c0_50] : memref<1x1x8x8xf32, #tpu.memory_space<vmem>>, vector<1x1x8x8xf32>
      %102 = vector.shape_cast %101 : vector<1x1x8x8xf32> to vector<8x8xf32>
      %103 = arith.truncf %102 : vector<8x8xf32> to vector<8x8xbf16>
      %cst_51 = arith.constant dense<0.000000e+00> : vector<8x16xf32>
      %104 = tpu.matmul %103, %100, %cst_51 {dimension_numbers = #tpu.dot_dimension_numbers<[1], [0], [0], [1], [0, 0, 1, 1], [], []>} : vector<8x8xbf16>, vector<8x16xbf16>, vector<8x16xf32> -> vector<8x16xf32>
      %105 = arith.truncf %104 : vector<8x16xf32> to vector<8x16xbf16>
      %c0_52 = arith.constant 0 : index
      %c0_53 = arith.constant 0 : index
      %c0_54 = arith.constant 0 : index
      %106 = vector.load %arg11[%c0_52, %c0_53, %c0_54] : memref<1x8x16xbf16, #tpu.memory_space<vmem>>, vector<1x8x16xbf16>
      %107 = vector.shape_cast %106 : vector<1x8x16xbf16> to vector<8x16xbf16>
      %108 = vector.shape_cast %105 : vector<8x16xbf16> to vector<1x8x16xbf16>
      tpu.vector_store %arg11[%c0_52, %c0_53, %c0_54], %108 {strides = array<i32>} : memref<1x8x16xbf16, #tpu.memory_space<vmem>>, vector<1x8x16xbf16>,
      %c0_55 = arith.constant 0 : index
      %c0_56 = arith.constant 0 : index
      %109 = vector.load %arg8[%c0_55, %c0_56] : memref<4x16xbf16, #tpu.memory_space<vmem>>, vector<4x16xbf16>
      %c0_57 = arith.constant 0 : index
      %c0_58 = arith.constant 0 : index
      %c0_59 = arith.constant 0 : index
      %c0_60 = arith.constant 0 : index
      %110 = vector.load %arg6[%c0_57, %c0_58, %c0_59, %c0_60] : memref<1x1x4x4xf32, #tpu.memory_space<vmem>>, vector<1x1x4x4xf32>
      %111 = vector.shape_cast %110 : vector<1x1x4x4xf32> to vector<4x4xf32>
      %112 = arith.truncf %111 : vector<4x4xf32> to vector<4x4xbf16>
      %cst_61 = arith.constant dense<0.000000e+00> : vector<4x16xf32>
      %113 = tpu.matmul %112, %109, %cst_61 {dimension_numbers = #tpu.dot_dimension_numbers<[1], [0], [0], [1], [0, 0, 1, 1], [], []>} : vector<4x4xbf16>, vector<4x16xbf16>, vector<4x16xf32> -> vector<4x16xf32>
      %114 = arith.truncf %113 : vector<4x16xf32> to vector<4x16xbf16>
      %c0_62 = arith.constant 0 : index
      %c0_63 = arith.constant 0 : index
      %c0_64 = arith.constant 0 : index
      %115 = vector.load %arg12[%c0_62, %c0_63, %c0_64] : memref<1x4x16xbf16, #tpu.memory_space<vmem>>, vector<1x4x16xbf16>
      %116 = vector.shape_cast %115 : vector<1x4x16xbf16> to vector<4x16xbf16>
      %117 = vector.shape_cast %114 : vector<4x16xbf16> to vector<1x4x16xbf16>
      tpu.vector_store %arg12[%c0_62, %c0_63, %c0_64], %117 {strides = array<i32>} : memref<1x4x16xbf16, #tpu.memory_space<vmem>>, vector<1x4x16xbf16>,
    } else {
    }
    %c0 = arith.constant 0 : index
    %c0_1 = arith.constant 0 : index
    %c0_2 = arith.constant 0 : index
    %c0_3 = arith.constant 0 : index
    %3 = vector.load %arg2[%c0, %c0_1, %c0_2, %c0_3] : memref<1x1x16x16xf32, #tpu.memory_space<vmem>>, vector<1x1x16x16xf32>
    %4 = vector.shape_cast %3 : vector<1x1x16x16xf32> to vector<16x16xf32>
    %cst = arith.constant 5.000000e-01 : f32
    %5 = vector.broadcast %cst : f32 to vector<16x16xf32>
    %6 = arith.cmpf ogt, %4, %5 : vector<16x16xf32>
    %7 = arith.extui %6 : vector<16x16xi1> to vector<16x16xi32>
    %8 = arith.sitofp %7 : vector<16x16xi32> to vector<16x16xf32>
    %9 = vector.shape_cast %8 : vector<16x16xf32> to vector<1x16x16xf32>
    %cst_4 = arith.constant dense<0.000000e+00> : vector<1xf32>
    %10 = vector.multi_reduction <add>, %9, %cst_4 [1, 2] : vector<1x16x16xf32> to vector<1xf32>
    %11 = vector.shape_cast %10 : vector<1xf32> to vector<1x1x1xf32>
    %12 = vector.extract %11[0, 0, 0] : f32 from vector<1x1x1xf32>
    %cst_5 = arith.constant 0.000000e+00 : f32
    %13 = arith.addf %cst_5, %12 : f32
    %c0_6 = arith.constant 0 : index
    %c0_7 = arith.constant 0 : index
    %14 = vector.load %arg4[%c0_6, %c0_7] : memref<16x8xbf16, #tpu.memory_space<vmem>>, vector<16x8xbf16>
    %c0_8 = arith.constant 0 : index
    %c0_9 = arith.constant 0 : index
    %c0_10 = arith.constant 0 : index
    %15 = vector.load %arg11[%c0_8, %c0_9, %c0_10] : memref<1x8x16xbf16, #tpu.memory_space<vmem>>, vector<1x8x16xbf16>
    %16 = vector.shape_cast %15 : vector<1x8x16xbf16> to vector<8x16xbf16>
    %cst_11 = arith.constant dense<0.000000e+00> : vector<16x16xf32>
    %17 = tpu.matmul %14, %16, %cst_11 {dimension_numbers = #tpu.dot_dimension_numbers<[1], [0], [0], [1], [0, 0, 1, 1], [], []>} : vector<16x8xbf16>, vector<8x16xbf16>, vector<16x16xf32> -> vector<16x16xf32>
    %cst_12 = arith.constant 0.000000e+00 : f32
    %18 = vector.broadcast %cst_12 : f32 to vector<16x16xf32>
    %19 = arith.maximumf %17, %18 : vector<16x16xf32>
    %20 = math.absf %17 : vector<16x16xf32>
    %cst_13 = arith.constant 0.000000e+00 : f32
    %21 = vector.broadcast %cst_13 : f32 to vector<16x16xf32>
    %22 = arith.subf %21, %20 : vector<16x16xf32>
    %23 = math.exp %22 : vector<16x16xf32>
    %cst_14 = arith.constant 1.000000e+00 : f32
    %24 = vector.broadcast %cst_14 : f32 to vector<16x16xf32>
    %25 = arith.addf %24, %23 : vector<16x16xf32>
    %26 = math.log %25 : vector<16x16xf32>
    %27 = arith.addf %19, %26 : vector<16x16xf32>
    %28 = arith.mulf %4, %17 : vector<16x16xf32>
    %29 = arith.subf %27, %28 : vector<16x16xf32>
    %cst_15 = arith.constant 0.000000e+00 : f32
    %30 = vector.broadcast %cst_15 : f32 to vector<16x16xf32>
    %31 = arith.select %6, %29, %30 : vector<16x16xi1>, vector<16x16xf32>
    %32 = vector.shape_cast %31 : vector<16x16xf32> to vector<1x16x16xf32>
    %cst_16 = arith.constant dense<0.000000e+00> : vector<1xf32>
    %33 = vector.multi_reduction <add>, %32, %cst_16 [1, 2] : vector<1x16x16xf32> to vector<1xf32>
    %34 = vector.shape_cast %33 : vector<1xf32> to vector<1x1x1xf32>
    %35 = vector.extract %34[0, 0, 0] : f32 from vector<1x1x1xf32>
    %cst_17 = arith.constant 0.000000e+00 : f32
    %36 = arith.addf %cst_17, %35 : f32
    %37 = vector.shape_cast %29 : vector<16x16xf32> to vector<1x16x16xf32>
    %cst_18 = arith.constant dense<0.000000e+00> : vector<1xf32>
    %38 = vector.multi_reduction <add>, %37, %cst_18 [1, 2] : vector<1x16x16xf32> to vector<1xf32>
    %39 = vector.shape_cast %38 : vector<1xf32> to vector<1x1x1xf32>
    %40 = vector.extract %39[0, 0, 0] : f32 from vector<1x1x1xf32>
    %cst_19 = arith.constant 0.000000e+00 : f32
    %41 = arith.addf %cst_19, %40 : f32
    %c0_20 = arith.constant 0 : index
    %c0_21 = arith.constant 0 : index
    %42 = vector.load %arg7[%c0_20, %c0_21] : memref<16x4xbf16, #tpu.memory_space<vmem>>, vector<16x4xbf16>
    %c0_22 = arith.constant 0 : index
    %c0_23 = arith.constant 0 : index
    %c0_24 = arith.constant 0 : index
    %43 = vector.load %arg12[%c0_22, %c0_23, %c0_24] : memref<1x4x16xbf16, #tpu.memory_space<vmem>>, vector<1x4x16xbf16>
    %44 = vector.shape_cast %43 : vector<1x4x16xbf16> to vector<4x16xbf16>
    %cst_25 = arith.constant dense<0.000000e+00> : vector<16x16xf32>
    %45 = tpu.matmul %42, %44, %cst_25 {dimension_numbers = #tpu.dot_dimension_numbers<[1], [0], [0], [1], [0, 0, 1, 1], [], []>} : vector<16x4xbf16>, vector<4x16xbf16>, vector<16x16xf32> -> vector<16x16xf32>
    %cst_26 = arith.constant 0.000000e+00 : f32
    %46 = vector.broadcast %cst_26 : f32 to vector<16x16xf32>
    %47 = arith.maximumf %45, %46 : vector<16x16xf32>
    %48 = math.absf %45 : vector<16x16xf32>
    %cst_27 = arith.constant 0.000000e+00 : f32
    %49 = vector.broadcast %cst_27 : f32 to vector<16x16xf32>
    %50 = arith.subf %49, %48 : vector<16x16xf32>
    %51 = math.exp %50 : vector<16x16xf32>
    %cst_28 = arith.constant 1.000000e+00 : f32
    %52 = vector.broadcast %cst_28 : f32 to vector<16x16xf32>
    %53 = arith.addf %52, %51 : vector<16x16xf32>
    %54 = math.log %53 : vector<16x16xf32>
    %55 = arith.addf %47, %54 : vector<16x16xf32>
    %56 = arith.mulf %4, %45 : vector<16x16xf32>
    %57 = arith.subf %55, %56 : vector<16x16xf32>
    %cst_29 = arith.constant 0.000000e+00 : f32
    %58 = vector.broadcast %cst_29 : f32 to vector<16x16xf32>
    %59 = arith.select %6, %57, %58 : vector<16x16xi1>, vector<16x16xf32>
    %60 = vector.shape_cast %59 : vector<16x16xf32> to vector<1x16x16xf32>
    %cst_30 = arith.constant dense<0.000000e+00> : vector<1xf32>
    %61 = vector.multi_reduction <add>, %60, %cst_30 [1, 2] : vector<1x16x16xf32> to vector<1xf32>
    %62 = vector.shape_cast %61 : vector<1xf32> to vector<1x1x1xf32>
    %63 = vector.extract %62[0, 0, 0] : f32 from vector<1x1x1xf32>
    %cst_31 = arith.constant 0.000000e+00 : f32
    %64 = arith.addf %cst_31, %63 : f32
    %65 = vector.shape_cast %57 : vector<16x16xf32> to vector<1x16x16xf32>
    %cst_32 = arith.constant dense<0.000000e+00> : vector<1xf32>
    %66 = vector.multi_reduction <add>, %65, %cst_32 [1, 2] : vector<1x16x16xf32> to vector<1xf32>
    %67 = vector.shape_cast %66 : vector<1xf32> to vector<1x1x1xf32>
    %68 = vector.extract %67[0, 0, 0] : f32 from vector<1x1x1xf32>
    %cst_33 = arith.constant 0.000000e+00 : f32
    %69 = arith.addf %cst_33, %68 : f32
    %70 = tpu.iota {dimensions = array<i32: 1>} : vector<8x128xi32>
    %cst_34 = arith.constant 0.000000e+00 : f32
    %71 = vector.broadcast %cst_34 : f32 to vector<8x128xf32>
    %c0_i32_35 = arith.constant 0 : i32
    %72 = vector.broadcast %c0_i32_35 : i32 to vector<8x128xi32>
    %73 = arith.cmpi eq, %70, %72 : vector<8x128xi32>
    %74 = vector.broadcast %13 : f32 to vector<8x128xf32>
    %75 = arith.select %73, %74, %71 : vector<8x128xi1>, vector<8x128xf32>
    %c1_i32 = arith.constant 1 : i32
    %76 = vector.broadcast %c1_i32 : i32 to vector<8x128xi32>
    %77 = arith.cmpi eq, %70, %76 : vector<8x128xi32>
    %78 = vector.broadcast %36 : f32 to vector<8x128xf32>
    %79 = arith.select %77, %78, %75 : vector<8x128xi1>, vector<8x128xf32>
    %c2_i32 = arith.constant 2 : i32
    %80 = vector.broadcast %c2_i32 : i32 to vector<8x128xi32>
    %81 = arith.cmpi eq, %70, %80 : vector<8x128xi32>
    %82 = vector.broadcast %41 : f32 to vector<8x128xf32>
    %83 = arith.select %81, %82, %79 : vector<8x128xi1>, vector<8x128xf32>
    %c3_i32 = arith.constant 3 : i32
    %84 = vector.broadcast %c3_i32 : i32 to vector<8x128xi32>
    %85 = arith.cmpi eq, %70, %84 : vector<8x128xi32>
    %86 = vector.broadcast %64 : f32 to vector<8x128xf32>
    %87 = arith.select %85, %86, %83 : vector<8x128xi1>, vector<8x128xf32>
    %c4_i32 = arith.constant 4 : i32
    %88 = vector.broadcast %c4_i32 : i32 to vector<8x128xi32>
    %89 = arith.cmpi eq, %70, %88 : vector<8x128xi32>
    %90 = vector.broadcast %69 : f32 to vector<8x128xf32>
    %91 = arith.select %89, %90, %87 : vector<8x128xi1>, vector<8x128xf32>
    %c0_36 = arith.constant 0 : index
    %c0_37 = arith.constant 0 : index
    %92 = vector.load %arg10[%c0_36, %c0_37] : memref<8x128xf32, #tpu.memory_space<vmem>>, vector<8x128xf32>
    %93 = arith.addf %92, %91 : vector<8x128xf32>
    %c0_38 = arith.constant 0 : index
    %c0_39 = arith.constant 0 : index
    %94 = vector.load %arg10[%c0_38, %c0_39] : memref<8x128xf32, #tpu.memory_space<vmem>>, vector<8x128xf32>
    tpu.vector_store %arg10[%c0_38, %c0_39], %93 {strides = array<i32>} : memref<8x128xf32, #tpu.memory_space<vmem>>, vector<8x128xf32>,
    %c0_i32_40 = arith.constant 0 : i32
    %95 = arith.cmpi eq, %arg1, %c0_i32_40 : i32
    %96 = arith.extui %95 : i1 to i32
    %c0_i32_41 = arith.constant 0 : i32
    %97 = arith.cmpi ne, %96, %c0_i32_41 : i32
    scf.if %97 {
      %c0_42 = arith.constant 0 : index
      %c0_43 = arith.constant 0 : index
      %98 = vector.load %arg10[%c0_42, %c0_43] : memref<8x128xf32, #tpu.memory_space<vmem>>, vector<8x128xf32>
      %c0_44 = arith.constant 0 : index
      %c0_45 = arith.constant 0 : index
      %c0_46 = arith.constant 0 : index
      %99 = vector.load %arg9[%c0_44, %c0_45, %c0_46] : memref<1x8x128xf32, #tpu.memory_space<vmem>>, vector<1x8x128xf32>
      %100 = vector.shape_cast %99 : vector<1x8x128xf32> to vector<8x128xf32>
      %101 = vector.shape_cast %98 : vector<8x128xf32> to vector<1x8x128xf32>
      tpu.vector_store %arg9[%c0_44, %c0_45, %c0_46], %101 {strides = array<i32>} : memref<1x8x128xf32, #tpu.memory_space<vmem>>, vector<1x8x128xf32>,
    } else {
    }
    return
  }
  func.func @transform_0(%arg0: i32, %arg1: i32) -> (i32, i32, i32, i32) {
    %c0_i32 = arith.constant 0 : i32
    %c0_i32_0 = arith.constant 0 : i32
    %c0_i32_1 = arith.constant 0 : i32
    return %arg0, %c0_i32, %arg1, %c0_i32_0 : i32, i32, i32, i32
  }
  func.func @transform_1(%arg0: i32, %arg1: i32) -> (i32, i32, i32, i32) {
    %c0_i32 = arith.constant 0 : i32
    %c0_i32_0 = arith.constant 0 : i32
    %c0_i32_1 = arith.constant 0 : i32
    %c0_i32_2 = arith.constant 0 : i32
    return %arg0, %c0_i32, %c0_i32_0, %c0_i32_1 : i32, i32, i32, i32
  }
  func.func @transform_2(%arg0: i32, %arg1: i32) -> (i32, i32) {
    %c0_i32 = arith.constant 0 : i32
    %c0_i32_0 = arith.constant 0 : i32
    return %arg1, %c0_i32 : i32, i32
  }
  func.func @transform_3(%arg0: i32, %arg1: i32) -> (i32, i32) {
    %c0_i32 = arith.constant 0 : i32
    %c0_i32_0 = arith.constant 0 : i32
    %c0_i32_1 = arith.constant 0 : i32
    return %c0_i32, %c0_i32_0 : i32, i32
  }
  func.func @transform_4(%arg0: i32, %arg1: i32) -> (i32, i32, i32, i32) {
    %c0_i32 = arith.constant 0 : i32
    %c0_i32_0 = arith.constant 0 : i32
    %c0_i32_1 = arith.constant 0 : i32
    %c0_i32_2 = arith.constant 0 : i32
    return %arg0, %c0_i32, %c0_i32_0, %c0_i32_1 : i32, i32, i32, i32
  }
  func.func @transform_5(%arg0: i32, %arg1: i32) -> (i32, i32) {
    %c0_i32 = arith.constant 0 : i32
    %c0_i32_0 = arith.constant 0 : i32
    return %arg1, %c0_i32 : i32, i32
  }
  func.func @transform_6(%arg0: i32, %arg1: i32) -> (i32, i32) {
    %c0_i32 = arith.constant 0 : i32
    %c0_i32_0 = arith.constant 0 : i32
    %c0_i32_1 = arith.constant 0 : i32
    return %c0_i32, %c0_i32_0 : i32, i32
  }
  func.func @transform_7(%arg0: i32, %arg1: i32) -> (i32, i32, i32) {
    %c0_i32 = arith.constant 0 : i32
    %c0_i32_0 = arith.constant 0 : i32
    %c0_i32_1 = arith.constant 0 : i32
    return %arg0, %c0_i32, %c0_i32_0 : i32, i32, i32
  }
}

</mosaic_0001>

<bundles_post_ra>
// kernel: tpu_custom_call.1
= control target key start
LH: loop header
LB: loop body
LE: loop exit
PB: predicated region body
PF: predicated region fallthrough
CT: control target
= control target key end

     0   :  { %s1369_s0 = inlined_call_operand.hbm [shape: f32[2,1,16,16], index: 0, kind: input, shape index: {}]   ;;  %s1370_s1 = inlined_call_operand.vmem [shape: f32[2,1,8,8], index: 1, kind: input, shape index: {}]   ;;  %s1371_s2 = inlined_call_operand.vmem [shape: bf16[16,8], index: 2, kind: input, shape index: {}]   ;;  %s1372_s3 = inlined_call_operand.vmem [shape: bf16[8,16], index: 3, kind: input, shape index: {}]   ;;  %s1373_s4 = inlined_call_operand.hbm [shape: f32[2,1,4,4], index: 4, kind: input, shape index: {}]   ;;  %s1374_s5 = inlined_call_operand.vmem [shape: bf16[16,4], index: 5, kind: input, shape index: {}]   ;;  %s1375_s6 = inlined_call_operand.vmem [shape: bf16[4,16], index: 6, kind: input, shape index: {}]   ;;  %s1376_s7 = inlined_call_operand.hbm [shape: f32[2,8,128], index: 7, kind: output, shape index: {}]  }
   0x1   :  { %1379 = sst [smem:[#allocation17_spill]] %s1369_s0 }
   0x2   :  { %12 = vsyncpa [#allocation6], 0 }
   0x3   :  { %14 = vsyncpa [#allocation6 + $0x1], 0 }
   0x4   :  { %15 = vsyncpa [#allocation9], 0 }
   0x5   :  { %17 = vsyncpa [#allocation9 + $0x1], 0 }
   0x6   :  { %18 = vsyncpa [#allocation7], 0 }
   0x7   :  { %20 = vsyncpa [#allocation7 + $0x1], 0  ;;  %s1169_s24 = smov 0   ;;  %s1171_s25 = smov 0  }
   0x8   :  { %s1173_s26 = smov 0   ;;  %s1175_s27 = smov 0  }
   0x9   :  { %s1177_s28 = smov 0   ;;  %s1179_s29 = smov 0  }
   0xa LB: > { %1380 = sst [smem:[#allocation14_spill]] %s1112_s26  ;;  %s845_s30 = sadd.s32 4294967295, %s1124_s29   ;;  %s1124_s29 = sphi %s1179_s29, %s26_s29   ;;  %s1120_s28 = sphi %s1177_s28, %s1395_s28   ;;  %s1116_s27 = sphi %s1175_s27, %s1394_s27   ;;  %s1112_s26 = sphi %s1173_s26, %s1390_s26   ;;  %s1108_s25 = sphi %s1171_s25, %s1393_s25   ;;  %s1104_s24 = sphi %s1169_s24, %s1392_s24  }
   0xb   : > { %s846_s8 = sadd.s32 4294967294, %s1124_s29   ;;  %s38_s9 = sadd.s32 1, %s1120_s28 }
   0xc   : > { %s47_s10 = sadd.s32 1, %s1112_s26  ;;  %p40_p0 = scmp.ge.s32.totalorder %s38_s9, 2 }
   0xd   : > { %p54_p1 = scmp.ne.s32.totalorder %s1112_s26, %s1108_s25  ;;  %p55_p2 = scmp.eq.s32.totalorder %s1124_s29, 0 }
   0xe   : > { %p60_p3 = scmp.ne.s32.totalorder %s1108_s25, %s1104_s24  ;;  %s1397_s9 = smov (%p40_p0, %s38_s9), 0 }
   0xf   : > { %1381 = sst [smem:[#allocation15_spill]] %s1397_s9  ;;  %p1210_p4 = por %p55_p2, %p54_p1 }
  0x10   : > { %p61_p5 = scmp.eq.s32.totalorder %s845_s30, 0  ;;  %s42_s12 = ssub.s32 %s1120_s28, %s1397_s9 }
  0x11   : > { %p230_p6 = scmp.eq.s32.totalorder %s845_s30, 1  ;;  %p45_p7 = scmp.eq.s32.totalorder %s42_s12, 0 }
  0x12   : > { %p1216_p8 = por %p61_p5, %p60_p3  ;;  %p236_p10 = scmp.eq.s32.totalorder %s846_s8, 1 }
  0x13   : > { %p1220_p9 = por %p230_p6, %p54_p1  ;;  %p850_p12 = scmp.ge.s32.totalorder %s1124_s29, 2 }
  0x14   : > { %s1225_s15 = scalar_select %p45_p7, %s1112_s26, %s47_s10  }
  0x15   : > { %p1227_p11 = por %p236_p10, %p60_p3  ;;  %p909_p13 = scmp.lt.s32.totalorder %s1124_s29, 2 }
  0x16   : > { %1385 = sst [smem:[#allocation16_spill]] %s1225_s15  ;;  %s280_s17 = sand.u32 1, %s1112_s26  }
  0x17   : > { %s851_s18 = sshll.u32 %s280_s17, 4  ;;  %s879_s19 = sshll.u32 %s1120_s28, 4 }
  0x18   : > { %s1387_s0 = sld [smem:[#allocation17_spill]]  ;;  %s284_s23 = scalar_lea.vmem [#allocation5], %s851_s18 }
  0x19   : > { %s294_s30 = sshll.u32 %s284_s23, 4  ;;  %p1240_p0 = pnand %p909_p13, %p1210_p4  ;;  %s295_s30 = int_to_ptr.vmem [resolvable:$true] %s294_s30 }
  0x1a   : > { %p856_p1 = scmp.ge.s32.totalorder %s1124_s29, 1  ;;  %s281_s12 = scalar_lea.sflag [#allocation6], %s280_s17 }
  0x1b   : > { %s1126_s9 = smov 128   ;;  %s1127_s15 = smov 8  }
  0x1c   : > { %p328_p2 = scmp.lt.s32.totalorder %s1124_s29, 3  ;;  %s855_s18 = sshll.u32 %s1120_s28, 2 }
  0x1d   : > { %s319_s11 = scalar_lea.hbm %s1373_s4, %s855_s18  ;;  %s312_s26 = scalar_lea.sflag [#allocation9], %s280_s17 }
  0x1e   : > { %s291_s22 = scalar_lea.hbm %s1387_s0, %s879_s19  ;;  %s854_s19 = sshll.u32 %s280_s17, 2 }
  0x1f   : > { %s292_s8 = sshll.u32 %s291_s22, 4  ;;  %p329_p3 = pnand %p856_p1, %p328_p2  ;;  %s293_s8 = int_to_ptr.hbm [resolvable:$true] %s292_s8 }
  0x20   : > { %901 = dma.hbm_to_vmem [thread:$0]  (!%p1240_p0), %s293_s8, 256, %s295_s30, %s281_s12, %s1126_s9, %s1126_s9, %s1127_s15  }
  0x21   : > { %s315_s22 = scalar_lea.vmem [#allocation8], %s854_s19  ;;  %s321_s0 = sshll.u32 %s319_s11, 4  ;;  %s322_s0 = int_to_ptr.hbm [resolvable:$true] %s321_s0 }
  0x22   : > { %s323_s23 = sshll.u32 %s315_s22, 4  ;;  %332 = sbr.rel (%p329_p3) target bundleno = 555 (0x22b), region = 48  ;;  %s324_s23 = int_to_ptr.vmem [resolvable:$true] %s323_s23 }
  0x23   : > { %904 = dma.hbm_to_vmem [thread:$0]  (!%p1240_p0), %s322_s0, 64, %s324_s23, %s312_s26  }
  0x24   : > { %s1255_s9 = sand.u32 (!%p329_p3), 1, %s1108_s25  }
  0x25   : > { %s857_s15 = sshll.u32 (!%p329_p3), %s1255_s9, 4  ;;  %s335_s30 = scalar_lea.sflag (!%p329_p3), [#allocation6], %s1255_s9 }
  0x26   : > { %s1259_s8 = scalar_lea.vmem (!%p329_p3), [#allocation5], %s857_s15 }
  0x27   : > { %1091 = dma.done.wait (%p1216_p8), %s335_s30, 256  }
  0x28   : > { %1093 = vsyncadd (%p1216_p8), %s335_s30, 4294967040  ;;  %s858_s0 = sshll.u32 %s1255_s9, 2  ;;  %s345_s26 = scalar_lea.sflag [#allocation9], %s1255_s9 }
  0x29   : > { %s348_s17 = scalar_lea.vmem [#allocation8], %s858_s0 }
  0x2a   : > { %1095 = dma.done.wait (%p1216_p8), %s345_s26, 64  }
  0x2b   : > { %1097 = vsyncadd (%p1216_p8), %s345_s26, 4294967232  ;;  %p400_p4 = scmp.lt.s32.totalorder %s1116_s27, 1  ;;  %vm429_vm0 = vcmask 1043456   ;;  %vm456_vm1 = vcmask 1041408   ;;  %v422_v0 = vld [vmem:[%s1372_s3] sm:$0xf] }
  0x2c   : > { %v449_v1 = vld [vmem:[%s1375_s6] sm:$0x3]  ;;  %v431_v3 = vsel %vm429_vm0, %v422_v0, 0  ;;  %v450_v6 = vld [vmem:[%s348_s17] sm:$0xf]  ;;  %vm425_vm2 = vcmask 64512  }
  0x2d   : > { %s401_s10 = scalar_select %p400_p4, %s1116_s27, 1  ;;  %v458_v4 = vsel %vm456_vm1, %v449_v1, 0  ;;  %440 = vmatpush.bf16.msra.mxu0 %v431_v3  ;;  %v451_v7 = vpack.c.bf16 %v450_v6, %v450_v6  ;;  %vm452_vm3 = vcmask 31744   ;;  %vm447_vm4 = vcmask 125952   ;;  %v880_v17 = vld [vmem:[%s1371_s2] sm:$0xff] }
  0x2e   : > { %467 = vmatpush.bf16.msra.mxu1 %v458_v4  ;;  %vm474_vm5 = vcmask 123904   ;;  %v881_v19 = vld [vmem:[%s1374_s5] sm:$0xff]  ;;  %v1128_v22 = vmov 0.0   ;;  %vm484_vm8 = vcmask 130048   ;;  %s859_s26 = sshll.u32 %s1255_s9, 3  ;;  %s684_s13 = scalar_lea.sflag [#allocation7], %s1255_s9 }
  0x2f   : > { %s860_s12 = sshll.u32 %s401_s10, 3  ;;  %v1297_v20 = vld [vmem:[%s1259_s8] sm:$0xff]  ;;  %v1300_v21 = vld [vmem:[%s1259_s8 + $0x8] sm:$0xff]  ;;  %s876_s10 = sshll.u32 %s1116_s27, 3 }
  0x30   : > { %s403_s20 = scalar_lea.vmem %s1370_s1, %s860_s12  ;;  %vm478_vm6 = vcmp.gt.f32.partialorder %v1297_v20, 0.5  ;;  %vm479_vm7 = vcmp.gt.f32.partialorder %v1300_v21, 0.5  ;;  %s398_s21 = scalar_lea.vmem [#allocation10], %s859_s26 }
  0x31   : > { %v423_v2 = vld [vmem:[%s403_s20] sm:$0xff]  ;;  %862 = vmatmul.msk.bf16.vlgmr.msra.gmra.mxu1 %vm452_vm3, %v451_v7  ;;  %v863_v23 = vsel %vm478_vm6, 1.0, %v1128_v22  ;;  %v864_v24 = vsel %vm479_vm7, 1.0, %v1128_v22  ;;  %s694_s20 = scalar_lea.hbm %s1376_s7, %s876_s10  ;;  %s696_s11 = sshll.u32 %s398_s21, 4  ;;  %s697_s11 = int_to_ptr.vmem [resolvable:$true] %s696_s11 }
  0x32   : > { %v424_v5 = vpack.c.bf16 %v423_v2, %v423_v2  ;;  %v485_v26 = vsel %vm484_vm8, %v863_v23, 0.0  ;;  %v486_v27 = vsel %vm484_vm8, %v864_v24, 0.0  ;;  %s698_s22 = sshll.u32 %s694_s20, 4  ;;  %s1058_s26 = scalar_lea.hbm %s1376_s7, 16  ;;  %s699_s22 = int_to_ptr.hbm [resolvable:$true] %s698_s22 }
  0x33   : > { %v487_v30 = vadd.f32 %v486_v27, %v485_v26  ;;  %s1052_s15 = sshra.s32 %s699_s22, 4  ;;  %s1053_s15 = int_to_ptr.hbm [resolvable:$true] %s1052_s15 }
  0x34   : > { %861 = vmatmul.msk.bf16.vlgmr.msra.gmra.mxu0 %vm425_vm2, %v424_v5  ;;  %s1054_s30 = scalar_lea.hbm %s1053_s15, 8  ;;  %p1059_p8 = scmp.lt.s32.totalorder %s1053_s15, %s1376_s7 }
  0x35   : > { %488 = vadd.xlane.f32.xlu0 %v487_v30  ;;  %p1055_p5 = scmp.ne.s32.totalorder %s1053_s15, %s1054_s30  ;;  %p1060_p10 = scmp.lt.s32.totalorder %s1058_s26, %s1054_s30 }
  0x37   : > { %p1056_p6 = pnand %p1055_p5, %p1220_p9  ;;  %p1061_p13 = por %p1060_p10, %p1059_p8 }
  0x39   : > { %p1057_p7 = pneg %p1056_p6 }
  0x3b   : > { %p1062_p0 = pnand %p1061_p13, %p1057_p7 }
  0xa8   : > { %v489_v30 = vpop.xlane.xlu0 %488 }
  0xae   : > { %v469_v9 = vpop.f32.mrf.mxu1 }
  0xaf   : > { %v473_v11 = vpack.c.bf16 %v469_v9, %v469_v9 }
  0xb1   : > { %v442_v8 = vpop.f32.mrf.mxu0  ;;  %475 = vst.msk [vmem:[#allocation4] sm:$0x3] %vm474_vm5, %v473_v11 }
  0xb2   : > { %v446_v10 = vpack.c.bf16 %v442_v8, %v442_v8 }
  0xb4   : > { %448 = vst.msk [vmem:[#allocation3] sm:$0xf] %vm447_vm4, %v446_v10 }
  0xb6   : > { %v471_v13 = vpop.f32.mrf.mxu1 }
  0xb8   : > { %v580_v16 = vld [vmem:[#allocation4] sm:$0x3] }
  0xb9   : > { %v444_v12 = vpop.f32.mrf.mxu0  ;;  %v592_v18 = vsel %vm456_vm1, %v580_v16, 0 }
  0xba   : > { %601 = vmatpush.bf16.msra.mxu3 %v592_v18 }
  0xbb   : > { %v500_v14 = vld [vmem:[#allocation3] sm:$0xf] }
  0xbc   : > { %v512_v15 = vsel %vm429_vm0, %v500_v14, 0 }
  0xbd   : > { %521 = vmatpush.bf16.msra.mxu2 %v512_v15  ;;  %874 = vmatmul.msk.bf16.vlgmr.msra.gmra.mxu3 %vm452_vm3, %v881_v19 }
  0xc0   : > { %869 = vmatmul.msk.bf16.vlgmr.msra.gmra.mxu2 %vm425_vm2, %v880_v17 }
 0x140   : > { %v603_v29 = vpop.f32.mrf.mxu3 }
 0x141   : > { %v610_v31 = vand.u32 2147483647, %v603_v29  ;;  %v608_v60 = vmax.f32 %v603_v29, 0.0  ;;  %v626_v4 = vmul.f32 %v603_v29, %v1297_v20 }
 0x143   : > { %v523_v25 = vpop.f32.mrf.mxu2  ;;  %v612_v33 = vsub.f32 0.0, %v610_v31  ;;  %v490_v31 = vrot.slane %v489_v30, 4 }
 0x144   : > { %v530_v28 = vand.u32 2147483647, %v523_v25  ;;  %v528_v54 = vmax.f32 %v523_v25, 0.0  ;;  %v546_v58 = vmul.f32 %v523_v25, %v1297_v20 }
 0x145   : > { %v614_v35 = vmul.f32 1.442695, %v612_v33 }
 0x146   : > { %v532_v32 = vsub.f32 0.0, %v530_v28 }
 0x148   : > { %v534_v34 = vmul.f32 1.442695, %v532_v32  ;;  %v605_v38 = vpop.f32.mrf.mxu3  ;;  %v491_v32 = vadd.f32 %v490_v31, %v489_v30 }
 0x149   : > { %v611_v39 = vand.u32 2147483647, %v605_v38  ;;  %v609_v5 = vmax.f32 %v605_v38, 0.0  ;;  %v627_v10 = vmul.f32 %v605_v38, %v1300_v21 }
 0x14a   : > { %962 = vpow2.f32 %v534_v34  ;;  %v492_v33 = vrot.slane %v491_v32, 2 }
 0x14b   : > { %964 = vpow2.f32 %v614_v35  ;;  %v525_v36 = vpop.f32.mrf.mxu2  ;;  %v613_v41 = vsub.f32 0.0, %v611_v39 }
 0x14c   : > { %v531_v37 = vand.u32 2147483647, %v525_v36  ;;  %v529_v61 = vmax.f32 %v525_v36, 0.0  ;;  %v547_v3 = vmul.f32 %v525_v36, %v1300_v21  ;;  %v493_v34 = vadd.f32 %v492_v33, %v491_v32 }
 0x14d   : > { %v616_v46 = vmul.f32 1.442695, %v613_v41 }
 0x14e   : > { %v533_v40 = vsub.f32 0.0, %v531_v37  ;;  %v494_v35 = vrot.slane %v493_v34, 1 }
 0x150   : > { %v963_v42 = vpop.eup %962  ;;  %v536_v43 = vmul.f32 1.442695, %v533_v40  ;;  %v495_v21 = vadd.f32 %v494_v35, %v493_v34 }
 0x151   : > { %v965_v44 = vpop.eup %964  ;;  %v538_v45 = vadd.f32 1.0, %v963_v42 }
 0x152   : > { %v618_v47 = vadd.f32 1.0, %v965_v44  ;;  %966 = vpow2.f32 %v536_v43  ;;  %882 = vpush %v495_v21 }
 0x153   : > { %968 = vlog2.f32 %v538_v45 }
 0x154   : > { %970 = vpow2.f32 %v616_v46 }
 0x155   : > { %972 = vlog2.f32 %v618_v47 }
 0x158   : > { %v967_v48 = vpop.eup %966 }
 0x159   : > { %v969_v49 = vpop.eup %968  ;;  %v539_v50 = vadd.f32 1.0, %v967_v48 }
 0x15a   : > { %v541_v51 = vmul.f32 0.6931472, %v969_v49  ;;  %v971_v52 = vpop.eup %970 }
 0x15b   : > { %974 = vlog2.f32 %v539_v50  ;;  %v973_v53 = vpop.eup %972  ;;  %v619_v55 = vadd.f32 1.0, %v971_v52 }
 0x15c   : > { %v544_v56 = vadd.f32 %v541_v51, %v528_v54  ;;  %v621_v57 = vmul.f32 0.6931472, %v973_v53 }
 0x15d   : > { %976 = vlog2.f32 %v619_v55 }
 0x15e   : > { %v548_v63 = vsub.f32 %v544_v56, %v546_v58  ;;  %v624_v0 = vadd.f32 %v621_v57, %v608_v60 }
 0x160   : > { %v550_v8 = vsel %vm478_vm6, %v548_v63, 0.0  ;;  %v628_v11 = vsub.f32 %v624_v0, %v626_v4  ;;  %v565_v12 = vsel %vm484_vm8, %v548_v63, 0.0  ;;  %v658_v63 = vlaneseq }
 0x161   : > { %v975_v59 = vpop.eup %974  ;;  %v552_v17 = vsel %vm484_vm8, %v550_v8, 0.0 }
 0x162   : > { %v543_v62 = vmul.f32 0.6931472, %v975_v59  ;;  %v645_v22 = vsel %vm484_vm8, %v628_v11, 0.0  ;;  %v630_v26 = vsel %vm478_vm6, %v628_v11, 0.0  ;;  %v659_v0 = vand.u32 127, %v658_v63 }
 0x163   : > { %v977_v1 = vpop.eup %976  ;;  %v632_v28 = vsel %vm484_vm8, %v630_v26, 0.0 }
 0x164   : > { %v545_v2 = vadd.f32 %v543_v62, %v529_v61  ;;  %v623_v6 = vmul.f32 0.6931472, %v977_v1  ;;  %vm660_vm9 = vcmp.eq.s32.totalorder %v659_v0, 0  ;;  %vm663_vm10 = vcmp.eq.s32.totalorder %v659_v0, 1 }
 0x165   : > { %vm666_vm11 = vcmp.eq.s32.totalorder %v659_v0, 2  ;;  %vm669_vm12 = vcmp.eq.s32.totalorder %v659_v0, 3  ;;  %vm672_vm13 = vcmp.eq.s32.totalorder %v659_v0, 4 }
 0x166   : > { %v549_v7 = vsub.f32 %v545_v2, %v547_v3  ;;  %v625_v9 = vadd.f32 %v623_v6, %v609_v5 }
 0x168   : > { %v566_v13 = vsel %vm484_vm8, %v549_v7, 0.0  ;;  %v551_v14 = vsel %vm479_vm7, %v549_v7, 0.0  ;;  %v629_v15 = vsub.f32 %v625_v9, %v627_v10 }
 0x169   : > { %v567_v16 = vadd.f32 %v566_v13, %v565_v12  ;;  %v553_v18 = vsel %vm484_vm8, %v551_v14, 0.0 }
 0x16a   : > { %v554_v19 = vadd.f32 %v553_v18, %v552_v17  ;;  %v646_v23 = vsel %vm484_vm8, %v629_v15, 0.0  ;;  %v631_v24 = vsel %vm479_vm7, %v629_v15, 0.0 }
 0x16b   : > { %568 = vadd.xlane.f32.xlu1 %v567_v16  ;;  %v647_v25 = vadd.f32 %v646_v23, %v645_v22  ;;  %v633_v27 = vsel %vm484_vm8, %v631_v24, 0.0 }
 0x16c   : > { %555 = vadd.xlane.f32.xlu0 %v554_v19  ;;  %v634_v29 = vadd.f32 %v633_v27, %v632_v28 }
 0x16d   : > { %648 = vadd.xlane.f32.xlu2 %v647_v25 }
 0x173   : > { %635 = vadd.xlane.f32.xlu1 %v634_v29 }
 0x183   : > { %s883_s8 = spop %882 }
 0x184   : > { %v661_v1 = vstv %s883_s8 }
 0x185   : > { %v662_v3 = vsel %vm660_vm9, %v661_v1, 0.0 }
 0x1de   : > { %v569_v36 = vpop.xlane.xlu1 %568 }
 0x1df   : > { %v570_v37 = vrot.slane %v569_v36, 4  ;;  %v556_v38 = vpop.xlane.xlu0 %555 }
 0x1e0   : > { %v557_v20 = vrot.slane %v556_v38, 4  ;;  %v649_v39 = vpop.xlane.xlu2 %648 }
 0x1e1   : > { %v571_v40 = vadd.f32 %v570_v37, %v569_v36  ;;  %v650_v41 = vrot.slane %v649_v39, 4 }
 0x1e2   : > { %v558_v42 = vadd.f32 %v557_v20, %v556_v38 }
 0x1e3   : > { %v572_v43 = vrot.slane %v571_v40, 2  ;;  %v651_v44 = vadd.f32 %v650_v41, %v649_v39 }
 0x1e4   : > { %v559_v45 = vrot.slane %v558_v42, 2 }
 0x1e5   : > { %v573_v46 = vadd.f32 %v572_v43, %v571_v40  ;;  %v652_v47 = vrot.slane %v651_v44, 2 }
 0x1e6   : > { %v560_v48 = vadd.f32 %v559_v45, %v558_v42  ;;  %v636_v49 = vpop.xlane.xlu1 %635 }
 0x1e7   : > { %v637_v50 = vrot.slane %v636_v49, 4  ;;  %v574_v51 = vrot.slane %v573_v46, 1  ;;  %v653_v55 = vadd.f32 %v652_v47, %v651_v44 }
 0x1e8   : > { %v561_v52 = vrot.slane %v560_v48, 1 }
 0x1e9   : > { %v638_v53 = vadd.f32 %v637_v50, %v636_v49  ;;  %v575_v54 = vadd.f32 %v574_v51, %v573_v46  ;;  %v654_v59 = vrot.slane %v653_v55, 1 }
 0x1ea   : > { %v562_v56 = vadd.f32 %v561_v52, %v560_v48 }
 0x1eb   : > { %v639_v57 = vrot.slane %v638_v53, 2  ;;  %v655_v62 = vadd.f32 %v654_v59, %v653_v55 }
 0x1ec   : > { %884 = vpush %v562_v56 }
 0x1ed   : > { %v640_v58 = vadd.f32 %v639_v57, %v638_v53  ;;  %886 = vpush %v575_v54 }
 0x1ef   : > { %v641_v60 = vrot.slane %v640_v58, 1 }
 0x1f1   : > { %v642_v61 = vadd.f32 %v641_v60, %v640_v58 }
 0x1f3   : > { %888 = vpush %v642_v61 }
 0x1f4   : > { %890 = vpush %v655_v62 }
 0x21d   : > { %s885_s17 = spop %884 }
 0x21e   : > { %v664_v2 = vstv %s885_s17  ;;  %s887_s12 = spop %886 }
 0x21f   : > { %v665_v4 = vsel %vm663_vm10, %v664_v2, %v662_v3  ;;  %v667_v5 = vstv %s887_s12 }
 0x220   : > { %v668_v6 = vsel %vm666_vm11, %v667_v5, %v665_v4 }
 0x224   : > { %s889_s23 = spop %888 }
 0x225   : > { %v670_v7 = vstv %s889_s23  ;;  %s891_s27 = spop %890 }
 0x226   : > { %v671_v8 = vsel %vm669_vm12, %v670_v7, %v668_v6  ;;  %v673_v9 = vstv %s891_s27 }
 0x227   : > { %v674_v10 = vsel %vm672_vm13, %v673_v9, %v671_v8 }
 0x228   : > { %682 = vst [vmem:[%s398_s21] sm:$0xff] %v674_v10 }
 0x229   : > { %1065 = shalt.err (!%p1062_p0)
}
 0x22a   : > { %896 = dma.vmem_to_hbm [thread:$0]  (%p1220_p9), %s697_s11, 128, %s699_s22, %s684_s13  }
 0x22b PF: > { %s710_s9 = sand.u32 1, %s1104_s24   ;;  %p906_p1 = pnand %p850_p12, %p1227_p11 }
 0x22c   : > { %s711_s12 = scalar_lea.sflag [#allocation7], %s710_s9 }
 0x22d   : > { %p907_p2 = pneg %p906_p1 }
 0x22f   : > { %1099 = dma.done.wait (%p907_p2), %s711_s12, 128  }
 0x230   : > { %1101 = vsyncadd (%p907_p2), %s711_s12, 4294967168  ;;  %s26_s29 = sadd.s32 1, %s1124_s29   ;;  %s1389_s19 = sld [smem:[#allocation14_spill]] }
 0x231   : > { %p23_p3 = scmp.ge.s32.totalorder %s26_s29, 4   ;;  %s1390_s26 = sld [smem:[#allocation16_spill]] }
 0x232   : > { %s1391_s14 = sld [smem:[#allocation15_spill]]  ;;  %s1392_s24 = smov %s1108_s25 }
 0x233   : > { %s1394_s27 = smov %s1120_s28 }
 0x234   :  { %25 = sbr.rel (!%p23_p3) target bundleno = 10 (0xa), region = 123 }
 0x236   : > { %s1393_s25 = smov %s1389_s19 }
 0x238   : > { %s1395_s28 = smov %s1391_s14 }
 0x239   :  { %717 = vsyncpa [#allocation6], 1 }
 0x23a   :  { %719 = vsyncpa [#allocation6 + $0x1], 1 }
 0x23b   :  { %720 = vsyncpa [#allocation9], 1 }
 0x23c   :  { %722 = vsyncpa [#allocation9 + $0x1], 1 }
 0x23d   :  { %723 = vsyncpa [#allocation7], 1 }
 0x23e   :  { %725 = vsyncpa [#allocation7 + $0x1], 1 }

</bundles_post_ra>
